<compile_context>
chip_gen: v6e
topology: v6e:2x2x1
jax: 0.10.0
libtpu: 0.0.40
codegen_flags: <defaults>
</compile_context>

<pallas_src>
import functools

import jax
import jax.numpy as jnp
from jax.experimental import pallas as pl
from jax.experimental.pallas import tpu as pltpu

_GRAY_R, _GRAY_G, _GRAY_B = 0.2989, 0.587, 0.114
_TARGET_BLOCK_BYTES = 4 * 1024 * 1024  # ~4 MiB per input block (per perf review)


def _bright_sat_kernel(params_ref, x_ref, o_ref, *, method):
    # params_ref: SMEM (2,) float32 = [f, 1 - f]
    # x_ref block: (NB, 3, TH, TW) -- H on sublanes, W on lanes -> dense (8,128) vregs.
    f = params_ref[0]
    c = params_ref[1]
    x = x_ref[...].astype(jnp.float32)

    if method == "brightness":
        out = x * f
    else:  # saturation
        r = x[:, 0]                                     # (NB, TH, TW) dense tiles per channel
        g = x[:, 1]
        b = x[:, 2]
        gray = _GRAY_R * r + _GRAY_G * g + _GRAY_B * b  # pure per-lane VPU work
        out = f * x + c * gray[:, None]                 # broadcast over channel dim

    o_ref[...] = jnp.clip(out, 0.0, 1.0).astype(o_ref.dtype)


def _contrast_kernel(params_ref, means_ref, x_ref, o_ref):
    # means_ref block: (NB, 1, 1, 1) per-image gray means (precomputed, hoisted).
    f = params_ref[0]
    c = params_ref[1]
    x = x_ref[...].astype(jnp.float32)
    m = means_ref[...].astype(jnp.float32)
    out = f * x + c * m
    o_ref[...] = jnp.clip(out, 0.0, 1.0).astype(o_ref.dtype)


def _choose_blocks(N, C, H, W, itemsize):
    """Pick (nb, th, tw): lane-dense contiguous blocks of roughly _TARGET_BLOCK_BYTES."""
    # Lane axis: prefer full W (contiguous channel-plane rows, unmasked lane-dense stores).
    if C * 8 * W * itemsize <= _TARGET_BLOCK_BYTES or W <= 128:
        tw = W
    else:
        tw = max(128, (_TARGET_BLOCK_BYTES // (C * 8 * itemsize * 128)) * 128)
        tw = min(tw, (W // 128) * 128)
    # Sublane axis: fill the block budget, multiple of 8 (or full extent).
    max_th = max(8, ((_TARGET_BLOCK_BYTES // (C * tw * itemsize)) // 8) * 8)
    th = H if H <= max_th else max_th
    # Batch several whole images per block when images are small (keeps steps multi-MiB).
    nb = 1
    if th == H and tw == W:
        per_img = max(1, C * H * W * itemsize)
        nb = max(1, min(N, _TARGET_BLOCK_BYTES // per_img))
    return nb, th, tw


def color_filter(x, method, factor=0.2):
    """x: (N, 3, H, W) float image in [0, 1]. Returns same shape/dtype."""
    N, C, H, W = x.shape
    assert C == 3, "ColorJitter expects RGB input"
    assert jnp.issubdtype(x.dtype, jnp.floating), (
        "ColorFilter kernel expects float images in [0, 1] (uint8 not supported)")
    if method not in ("brightness", "contrast", "saturation"):
        raise ValueError(f"unknown color-jitter method: {method!r}")

    # Midpoint of (0.99 + factor, 1.01 + factor); kept as data (SMEM) -> no recompile per factor.
    factor = jnp.asarray(factor, dtype=jnp.float32)
    f = 1.0 + factor
    params = jnp.stack([f, 1.0 - f])  # (2,) float32

    itemsize = jnp.dtype(x.dtype).itemsize
    nb, th, tw = _choose_blocks(N, C, H, W, itemsize)
    grid = (pl.cdiv(N, nb), pl.cdiv(H, th), pl.cdiv(W, tw))

    x_spec = pl.BlockSpec((nb, C, th, tw), lambda b, i, j, params: (b, 0, i, j))

    if method == "contrast":
        # Per-image gray mean as a weighted sum of per-channel means: one fused reduce over x,
        # no (N, H, W) gray intermediate materialized in HBM.
        ch_means = jnp.mean(x, axis=(2, 3), dtype=jnp.float32)                 # (N, 3)
        weights = jnp.array([_GRAY_R, _GRAY_G, _GRAY_B], dtype=jnp.float32)    # (3,)
        means = (ch_means @ weights).reshape(N, 1, 1, 1)                       # (N, 1, 1, 1)

        means_spec = pl.BlockSpec((nb, 1, 1, 1), lambda b, i, j, params: (b, 0, 0, 0))
        kernel = _contrast_kernel
        in_specs = [means_spec, x_spec]
        operands = (params, means, x)
    else:
        kernel = functools.partial(_bright_sat_kernel, method=method)
        in_specs = [x_spec]
        operands = (params, x)

    out = pl.pallas_call(
        kernel,
        out_shape=jax.ShapeDtypeStruct((N, C, H, W), x.dtype),
        grid_spec=pltpu.PrefetchScalarGridSpec(
            num_scalar_prefetch=1,          # params -> SMEM, passed to every index_map
            grid=grid,
            in_specs=in_specs,
            out_specs=x_spec,
        ),
        compiler_params=pltpu.CompilerParams(
            dimension_semantics=("parallel", "parallel", "parallel"),
            vmem_limit_bytes=48 * 1024 * 1024,  # ~4 MiB blocks, double-buffered in+out
        ),
    )(*operands)

    return out


def _reference(x, method, factor=0.2):
    f = 1.0 + factor
    if method == "brightness":
        return jnp.clip(x * f, 0.0, 1.0)
    gray = _GRAY_R * x[:, 0:1] + _GRAY_G * x[:, 1:2] + _GRAY_B * x[:, 2:3]
    if method == "saturation":
        blend = gray
    else:  # contrast
        blend = jnp.mean(gray, axis=(1, 2, 3), keepdims=True)
    return jnp.clip(f * x + (1.0 - f) * blend, 0.0, 1.0)


if __name__ == "__main__":
    key = jax.random.PRNGKey(0)
    # Small shape consistent with the module: RGB images, NCHW.
    x = jax.random.uniform(key, (2, 3, 16, 16), dtype=jnp.float32)

    ok = True
    for method in ("brightness", "contrast", "saturation"):
        y = jax.block_until_ready(color_filter(x, method, factor=0.2))
        y_ref = _reference(x, method, factor=0.2)
        if not jnp.allclose(y, y_ref, atol=1e-5, rtol=1e-5):
            ok = False

    if ok:
        print("KERNEL_OK")
</pallas_src>

<mosaic_0001>
module attributes {stable_mosaic.version = 11 : i64} {
  func.func @_bright_sat_kernel(%arg0: i32, %arg1: i32, %arg2: i32, %arg3: memref<2xf32, #tpu.memory_space<smem>>, %arg4: memref<2x3x16x16xf32, #tpu.memory_space<vmem>>, %arg5: memref<2x3x16x16xf32, #tpu.memory_space<vmem>>) attributes {dimension_semantics = [#tpu.dimension_semantics<parallel>, #tpu.dimension_semantics<parallel>, #tpu.dimension_semantics<parallel>], iteration_bounds = array<i64: 1, 1, 1>, scalar_prefetch = 1 : i64, scratch_operands = 0 : i64, tpu.core_type = #tpu.core_type<tc>, window_params = [{transform_indices = @transform_0, window_bounds = array<i64: 2, 3, 16, 16>}, {transform_indices = @transform_1, window_bounds = array<i64: 2, 3, 16, 16>}]} {
    %c0 = arith.constant 0 : index
    %0 = memref.load %arg3[%c0] : memref<2xf32, #tpu.memory_space<smem>>
    %c0_0 = arith.constant 0 : index
    %c0_1 = arith.constant 0 : index
    %c0_2 = arith.constant 0 : index
    %c0_3 = arith.constant 0 : index
    %1 = vector.load %arg4[%c0_0, %c0_1, %c0_2, %c0_3] : memref<2x3x16x16xf32, #tpu.memory_space<vmem>>, vector<2x3x16x16xf32>
    %2 = vector.broadcast %0 : f32 to vector<2x3x16x16xf32>
    %3 = arith.mulf %1, %2 : vector<2x3x16x16xf32>
    %cst = arith.constant 0.000000e+00 : f32
    %cst_4 = arith.constant 1.000000e+00 : f32
    %4 = vector.broadcast %cst : f32 to vector<2x3x16x16xf32>
    %5 = arith.maximumf %4, %3 : vector<2x3x16x16xf32>
    %6 = vector.broadcast %cst_4 : f32 to vector<2x3x16x16xf32>
    %7 = arith.minimumf %6, %5 : vector<2x3x16x16xf32>
    %c0_5 = arith.constant 0 : index
    %c0_6 = arith.constant 0 : index
    %c0_7 = arith.constant 0 : index
    %c0_8 = arith.constant 0 : index
    %8 = vector.load %arg5[%c0_5, %c0_6, %c0_7, %c0_8] : memref<2x3x16x16xf32, #tpu.memory_space<vmem>>, vector<2x3x16x16xf32>
    tpu.vector_store %arg5[%c0_5, %c0_6, %c0_7, %c0_8], %7 {strides = array<i32>} : memref<2x3x16x16xf32, #tpu.memory_space<vmem>>, vector<2x3x16x16xf32>,
    return
  }
  func.func @transform_0(%arg0: i32, %arg1: i32, %arg2: i32, %arg3: memref<2xf32, #tpu.memory_space<smem>>) -> (i32, i32, i32, i32) {
    %c0_i32 = arith.constant 0 : i32
    %c0_i32_0 = arith.constant 0 : i32
    return %arg0, %c0_i32, %arg1, %arg2 : i32, i32, i32, i32
  }
  func.func @transform_1(%arg0: i32, %arg1: i32, %arg2: i32, %arg3: memref<2xf32, #tpu.memory_space<smem>>) -> (i32, i32, i32, i32) {
    %c0_i32 = arith.constant 0 : i32
    %c0_i32_0 = arith.constant 0 : i32
    return %arg0, %c0_i32, %arg1, %arg2 : i32, i32, i32, i32
  }
}

</mosaic_0001>

<bundles_post_ra>
// kernel: tpu_custom_call.1
= control target key start
LH: loop header
LB: loop body
LE: loop exit
PB: predicated region body
PF: predicated region fallthrough
CT: control target
= control target key end

     0   :  { %s167_s9 = smov [#allocation3]   ;;  %s214_s0 = inlined_call_operand.hbm [shape: f32[2], index: 0, kind: input, shape index: {}]   ;;  %s215_s1 = inlined_call_operand.hbm [shape: f32[2,3,16,16], index: 1, kind: input, shape index: {}]   ;;  %s216_s2 = inlined_call_operand.hbm [shape: f32[2,3,16,16], index: 2, kind: output, shape index: {}]  }
   0x1   :  { %8 = dma.hbm_to_smem %s214_s0, 16, %s167_s9, [#allocation2] }
   0x2   :  { %161 = dma.done.wait [#allocation2], 16 }
   0x3   :  { %162 = vsyncadd [#allocation2], 4294967280 }
   0x4   :  { %10 = sfence }
   0x5   :  { %11 = vsyncpa [#allocation5], 0 }
   0x6   :  { %12 = vsyncpa [#allocation6], 0  ;;  %s168_s12 = smov [#allocation4]  }
   0x7   :  { %s18_s13 = sshll.u32 %s168_s12, 4  ;;  %s19_s13 = int_to_ptr.vmem [resolvable:$true] %s18_s13 }
   0x8   :  { %s129_s14 = scalar_lea.vmem %s19_s13, 1536  ;;  %p134_p1 = scmp.lt.s32.totalorder %s19_s13, %s19_s13 }
   0x9   :  { %p130_p0 = scmp.ne.s32.totalorder %s19_s13, %s129_s14  ;;  %p135_p2 = scmp.lt.s32.totalorder %s129_s14, %s129_s14 }
   0xb   :  { %p136_p3 = por %p135_p2, %p134_p1 }
   0xd   :  { %p137_p4 = pnand %p136_p3, %p130_p0 }
   0xf   :  { %140 = shalt.err (!%p137_p4)
}
  0x10   :  { %s169_s15 = smov 128   ;;  %s170_s16 = smov 8  }
  0x11   :  { %24 = dma.hbm_to_vmem [thread:$0]  %s215_s1, 1536, %s19_s13, [#allocation5], %s169_s15, %s169_s15, %s170_s16  }
  0x12   :  { %163 = dma.done.wait [#allocation5], 1536  }
  0x13   :  { %164 = vsyncadd [#allocation5], 4294965760  ;;  %s28_s18 = sld [smem:[#allocation3]]  ;;  %v29_v0 = vld [vmem:[#allocation4] sm:$0xff]  ;;  %v30_v2 = vld [vmem:[#allocation4 + $0x8] sm:$0xff]  ;;  %vm78_vm0 = vcmask 130048  }
  0x14   :  { %v31_v3 = vld [vmem:[#allocation4 + $0x10] sm:$0xff]  ;;  %v32_v7 = vld [vmem:[#allocation4 + $0x18] sm:$0xff]  ;;  %v33_v8 = vld [vmem:[#allocation4 + $0x20] sm:$0xff]  ;;  %s171_s1 = smov [#allocation7]  }
  0x15   :  { %v34_v9 = vld [vmem:[#allocation4 + $0x28] sm:$0xff]  ;;  %v35_v13 = vld [vmem:[#allocation4 + $0x30] sm:$0xff]  ;;  %v36_v14 = vld [vmem:[#allocation4 + $0x38] sm:$0xff]  ;;  %s96_s19 = sshll.u32 %s171_s1, 4  ;;  %s97_s19 = int_to_ptr.vmem [resolvable:$true] %s96_s19 }
  0x16   :  { %v37_v23 = vld [vmem:[#allocation4 + $0x40] sm:$0xff]  ;;  %v38_v24 = vld [vmem:[#allocation4 + $0x48] sm:$0xff]  ;;  %v39_v25 = vld [vmem:[#allocation4 + $0x50] sm:$0xff]  ;;  %s141_s20 = scalar_lea.vmem %s97_s19, 1536  ;;  %p146_p6 = scmp.lt.s32.totalorder %s97_s19, %s97_s19 }
  0x17   :  { %v40_v30 = vld [vmem:[#allocation4 + $0x58] sm:$0xff]  ;;  %p142_p5 = scmp.ne.s32.totalorder %s97_s19, %s141_s20  ;;  %p147_p7 = scmp.lt.s32.totalorder %s141_s20, %s141_s20 }
  0x19   :  { %v41_v1 = vstv %s28_s18  ;;  %p148_p8 = por %p147_p7, %p146_p6 }
  0x1a   :  { %v42_v4 = vmul.f32 %v41_v1, %v29_v0  ;;  %v43_v5 = vmul.f32 %v41_v1, %v30_v2  ;;  %v44_v6 = vmul.f32 %v41_v1, %v31_v3  ;;  %v45_v10 = vmul.f32 %v41_v1, %v32_v7 }
  0x1b   :  { %v46_v11 = vmul.f32 %v41_v1, %v33_v8  ;;  %v47_v12 = vmul.f32 %v41_v1, %v34_v9  ;;  %v48_v18 = vmul.f32 %v41_v1, %v35_v13  ;;  %v49_v22 = vmul.f32 %v41_v1, %v36_v14  ;;  %p149_p9 = pnand %p148_p8, %p142_p5 }
  0x1c   :  { %v54_v15 = vmax.f32 %v42_v4, 0.0  ;;  %v55_v16 = vmax.f32 %v43_v5, 0.0  ;;  %v56_v17 = vmax.f32 %v44_v6, 0.0  ;;  %v57_v19 = vmax.f32 %v45_v10, 0.0 }
  0x1d   :  { %v58_v20 = vmax.f32 %v46_v11, 0.0  ;;  %v59_v21 = vmax.f32 %v47_v12, 0.0  ;;  %v60_v29 = vmax.f32 %v48_v18, 0.0  ;;  %v61_v34 = vmax.f32 %v49_v22, 0.0 }
  0x1e   :  { %v66_v26 = vmin.f32 %v54_v15, 1.0  ;;  %v67_v27 = vmin.f32 %v55_v16, 1.0  ;;  %v68_v28 = vmin.f32 %v56_v17, 1.0  ;;  %v69_v31 = vmin.f32 %v57_v19, 1.0 }
  0x1f   :  { %v70_v32 = vmin.f32 %v58_v20, 1.0  ;;  %v71_v33 = vmin.f32 %v59_v21, 1.0  ;;  %v72_v35 = vmin.f32 %v60_v29, 1.0  ;;  %v50_v36 = vmul.f32 %v41_v1, %v37_v23 }
  0x20   :  { %79 = vst.msk [vmem:[#allocation7] sm:$0xff] %vm78_vm0, %v66_v26  ;;  %80 = vst.msk [vmem:[#allocation7 + $0x8] sm:$0xff] %vm78_vm0, %v67_v27  ;;  %v51_v37 = vmul.f32 %v41_v1, %v38_v24  ;;  %v52_v38 = vmul.f32 %v41_v1, %v39_v25  ;;  %v73_v39 = vmin.f32 %v61_v34, 1.0  ;;  %v53_v40 = vmul.f32 %v41_v1, %v40_v30 }
  0x21   :  { %81 = vst.msk [vmem:[#allocation7 + $0x10] sm:$0xff] %vm78_vm0, %v68_v28  ;;  %82 = vst.msk [vmem:[#allocation7 + $0x18] sm:$0xff] %vm78_vm0, %v69_v31  ;;  %v62_v41 = vmax.f32 %v50_v36, 0.0 }
  0x22   :  { %83 = vst.msk [vmem:[#allocation7 + $0x20] sm:$0xff] %vm78_vm0, %v70_v32  ;;  %84 = vst.msk [vmem:[#allocation7 + $0x28] sm:$0xff] %vm78_vm0, %v71_v33  ;;  %v63_v42 = vmax.f32 %v51_v37, 0.0  ;;  %v64_v43 = vmax.f32 %v52_v38, 0.0  ;;  %v65_v44 = vmax.f32 %v53_v40, 0.0 }
  0x23   :  { %85 = vst.msk [vmem:[#allocation7 + $0x30] sm:$0xff] %vm78_vm0, %v72_v35  ;;  %86 = vst.msk [vmem:[#allocation7 + $0x38] sm:$0xff] %vm78_vm0, %v73_v39  ;;  %v74_v45 = vmin.f32 %v62_v41, 1.0 }
  0x24   :  { %v75_v46 = vmin.f32 %v63_v42, 1.0  ;;  %v76_v47 = vmin.f32 %v64_v43, 1.0  ;;  %v77_v48 = vmin.f32 %v65_v44, 1.0 }
  0x25   :  { %87 = vst.msk [vmem:[#allocation7 + $0x40] sm:$0xff] %vm78_vm0, %v74_v45 }
  0x26   :  { %88 = vst.msk [vmem:[#allocation7 + $0x48] sm:$0xff] %vm78_vm0, %v75_v46  ;;  %89 = vst.msk [vmem:[#allocation7 + $0x50] sm:$0xff] %vm78_vm0, %v76_v47 }
  0x27   :  { %90 = vst.msk [vmem:[#allocation7 + $0x58] sm:$0xff] %vm78_vm0, %v77_v48 }
  0x28   :  { %152 = shalt.err (!%p149_p9)
}
  0x29   :  { %102 = dma.vmem_to_hbm [thread:$0]  %s97_s19, 1536, %s216_s2, [#allocation6], %s169_s15, %s169_s15, %s170_s16  }
  0x2a   :  { %165 = dma.done.wait [#allocation6], 1536  }
  0x2b   :  { %166 = vsyncadd [#allocation6], 4294965760 }
  0x2c   :  { %106 = vsyncpa [#allocation5], 1 }
  0x2d   :  { %107 = vsyncpa [#allocation6], 1 }

</bundles_post_ra>
